<compile_context>
chip_gen: v5e
topology: v5e:2x2
jax: 0.10.0
libtpu: 0.0.40
codegen_flags: <defaults>
</compile_context>

<pallas_src>
import jax
import jax.numpy as jnp
from jax import lax
from jax.experimental import pallas as pl
from jax.experimental.pallas import tpu as pltpu


def _round_up(n, m):
    return ((n + m - 1) // m) * m


def _pick_tb(b_pad, cap=1024):
    """Largest multiple of 128 <= cap dividing b_pad; grid >= 2 when b_pad >= 256."""
    cap = min(cap, b_pad)
    if b_pad >= 256:
        # Ensure at least two grid steps so a 2-TC chip (v7x) can shard the batch axis.
        cap = min(cap, _round_up(b_pad // 2, 128))
    tb = cap
    while tb > 128 and b_pad % tb != 0:
        tb -= 128
    return tb


def mlp_kernel(x_ref,
               w1_ref, b1_ref,
               w2_ref, b2_ref,
               w3_ref, b3_ref,
               w4_ref, b4_ref,
               o_ref):
    # x tile: (TB, 4) in natural batch-major layout.
    x = x_ref[...]

    # Layer 1: contract the size-4 feature axis of W1 (32,4) and x (TB,4) -> (32, TB).
    # This does the batch->lane transpose on the MXU; no host transpose needed.
    h = lax.dot_general(w1_ref[...], x, (((1,), (1,)), ((), ())),
                        preferred_element_type=jnp.float32) + b1_ref[...]
    h = jnp.maximum(h, 0.0)                                   # (32, TB)

    h = jnp.dot(w2_ref[...], h, preferred_element_type=jnp.float32) + b2_ref[...]
    h = jnp.maximum(h, 0.0)                                   # (64, TB)

    h = jnp.dot(w3_ref[...], h, preferred_element_type=jnp.float32) + b3_ref[...]
    h = jnp.maximum(h, 0.0)                                   # (32, TB)

    # Final layer: no activation. Output tile (1, TB) is lane-dense -> unmasked stores.
    o_ref[...] = jnp.dot(w4_ref[...], h, preferred_element_type=jnp.float32) + b4_ref[...]


def simple_nn_forward(x, params, *, tb_cap=1024):
    """x: (B, 4) float32. params: w1..w4 in (out, in) layout, b1..b4 as (out, 1)."""
    B = x.shape[0]

    # Lane-dense batch tiling: pad batch to a multiple of 128 first, then pick tb.
    B_pad = _round_up(B, 128)
    tb = _pick_tb(B_pad, cap=tb_cap)

    # Only pad the batch axis (fusable; padded rows produce garbage columns that are
    # never returned — compute is column-independent).
    if B_pad != B:
        x = jnp.pad(x, ((0, B_pad - B), (0, 0)))

    w1, b1 = params["w1"], params["b1"]
    w2, b2 = params["w2"], params["b2"]
    w3, b3 = params["w3"], params["b3"]
    w4, b4 = params["w4"], params["b4"]

    # Weights/biases: full-array blocks with constant index maps -> VMEM-resident
    # across all grid steps (no re-DMA per step).
    resident = lambda a: pl.BlockSpec(a.shape, lambda i: (0, 0))

    grid = (B_pad // tb,)

    out_t = pl.pallas_call(
        mlp_kernel,
        out_shape=jax.ShapeDtypeStruct((1, B_pad), jnp.float32),
        grid=grid,
        in_specs=[
            pl.BlockSpec((tb, 4), lambda i: (i, 0)),   # x tile, pipelined over batch
            resident(w1), resident(b1),
            resident(w2), resident(b2),
            resident(w3), resident(b3),
            resident(w4), resident(b4),
        ],
        out_specs=pl.BlockSpec((1, tb), lambda i: (0, i)),
        compiler_params=pltpu.CompilerParams(
            dimension_semantics=("parallel",),         # megacore sharding on v7x
        ),
    )(x, w1, b1, w2, b2, w3, b3, w4, b4)

    # Back to PyTorch layout (B, 1) via slice + reshape (no transpose copy).
    return out_t[0, :B][:, None]


def init_params(key):
    """Mimics nn.Linear default init: uniform(+/- 1/sqrt(fan_in)) for W and b.

    W stored as (out_features, in_features); b stored as (out_features, 1).
    """
    sizes = [(4, 32), (32, 64), (64, 32), (32, 1)]
    params = {}
    for i, (fan_in, fan_out) in enumerate(sizes, start=1):
        key, kw, kb = jax.random.split(key, 3)
        bound = 1.0 / jnp.sqrt(jnp.float32(fan_in))
        params[f"w{i}"] = jax.random.uniform(
            kw, (fan_out, fan_in), jnp.float32, minval=-bound, maxval=bound)
        params[f"b{i}"] = jax.random.uniform(
            kb, (fan_out, 1), jnp.float32, minval=-bound, maxval=bound)
    return params


def reference_forward(x, params):
    h = x
    for i in range(1, 5):
        w, b = params[f"w{i}"], params[f"b{i}"]
        h = h @ w.T + b.T
        if i < 4:
            h = jnp.maximum(h, 0.0)
    return h


if __name__ == "__main__":
    key = jax.random.PRNGKey(0)
    key, kx = jax.random.split(key)

    # Non-multiple-of-128 batch: exercises tail padding and a 2-step grid
    # (B=200 -> B_pad=256, tb=128, grid=(2,)).
    B = 200
    x = jax.random.normal(kx, (B, 4), dtype=jnp.float32)
    params = init_params(key)

    fwd = jax.jit(simple_nn_forward)
    out = fwd(x, params)
    out = jax.block_until_ready(out)

    ref = reference_forward(x, params)
    assert out.shape == (B, 1)
    assert jnp.allclose(out, ref, atol=1e-4, rtol=1e-4), "mismatch vs pure-JAX reference"

    print("KERNEL_OK")
</pallas_src>

<mosaic_0001>
module attributes {stable_mosaic.version = 11 : i64} {
  func.func @mlp_kernel(%arg0: i32, %arg1: memref<128x4xf32, #tpu.memory_space<vmem>>, %arg2: memref<32x4xf32, #tpu.memory_space<vmem>>, %arg3: memref<32x1xf32, #tpu.memory_space<vmem>>, %arg4: memref<64x32xf32, #tpu.memory_space<vmem>>, %arg5: memref<64x1xf32, #tpu.memory_space<vmem>>, %arg6: memref<32x64xf32, #tpu.memory_space<vmem>>, %arg7: memref<32x1xf32, #tpu.memory_space<vmem>>, %arg8: memref<1x32xf32, #tpu.memory_space<vmem>>, %arg9: memref<1x1xf32, #tpu.memory_space<vmem>>, %arg10: memref<1x128xf32, #tpu.memory_space<vmem>>) attributes {dimension_semantics = [#tpu.dimension_semantics<parallel>], iteration_bounds = array<i64: 2>, scalar_prefetch = 0 : i64, scratch_operands = 0 : i64, tpu.core_type = #tpu.core_type<tc>, window_params = [{transform_indices = @transform_0, window_bounds = array<i64: 128, 4>}, {pipeline_mode = #tpu.pipeline_mode<synchronous>, transform_indices = @transform_1, window_bounds = array<i64: 32, 4>}, {pipeline_mode = #tpu.pipeline_mode<synchronous>, transform_indices = @transform_2, window_bounds = array<i64: 32, 1>}, {pipeline_mode = #tpu.pipeline_mode<synchronous>, transform_indices = @transform_3, window_bounds = array<i64: 64, 32>}, {pipeline_mode = #tpu.pipeline_mode<synchronous>, transform_indices = @transform_4, window_bounds = array<i64: 64, 1>}, {pipeline_mode = #tpu.pipeline_mode<synchronous>, transform_indices = @transform_5, window_bounds = array<i64: 32, 64>}, {pipeline_mode = #tpu.pipeline_mode<synchronous>, transform_indices = @transform_6, window_bounds = array<i64: 32, 1>}, {pipeline_mode = #tpu.pipeline_mode<synchronous>, transform_indices = @transform_7, window_bounds = array<i64: 1, 32>}, {pipeline_mode = #tpu.pipeline_mode<synchronous>, transform_indices = @transform_8, window_bounds = array<i64: 1, 1>}, {transform_indices = @transform_9, window_bounds = array<i64: 1, 128>}]} {
    %c0 = arith.constant 0 : index
    %c0_0 = arith.constant 0 : index
    %0 = vector.load %arg1[%c0, %c0_0] : memref<128x4xf32, #tpu.memory_space<vmem>>, vector<128x4xf32>
    %c0_1 = arith.constant 0 : index
    %c0_2 = arith.constant 0 : index
    %1 = vector.load %arg2[%c0_1, %c0_2] : memref<32x4xf32, #tpu.memory_space<vmem>>, vector<32x4xf32>
    %cst = arith.constant dense<0.000000e+00> : vector<32x128xf32>
    %2 = tpu.matmul %1, %0, %cst {dimension_numbers = #tpu.dot_dimension_numbers<[1], [1], [0], [0], [0, 0, 1, 0], [], []>} : vector<32x4xf32>, vector<128x4xf32>, vector<32x128xf32> -> vector<32x128xf32>
    %c0_3 = arith.constant 0 : index
    %c0_4 = arith.constant 0 : index
    %3 = vector.load %arg3[%c0_3, %c0_4] : memref<32x1xf32, #tpu.memory_space<vmem>>, vector<32x1xf32>
    %4 = vector.broadcast %3 : vector<32x1xf32> to vector<32x128xf32>
    %5 = arith.addf %2, %4 : vector<32x128xf32>
    %cst_5 = arith.constant 0.000000e+00 : f32
    %6 = vector.broadcast %cst_5 : f32 to vector<32x128xf32>
    %7 = arith.maximumf %5, %6 : vector<32x128xf32>
    %c0_6 = arith.constant 0 : index
    %c0_7 = arith.constant 0 : index
    %8 = vector.load %arg4[%c0_6, %c0_7] : memref<64x32xf32, #tpu.memory_space<vmem>>, vector<64x32xf32>
    %cst_8 = arith.constant dense<0.000000e+00> : vector<64x128xf32>
    %9 = tpu.matmul %8, %7, %cst_8 {dimension_numbers = #tpu.dot_dimension_numbers<[1], [0], [0], [1], [0, 0, 1, 1], [], []>} : vector<64x32xf32>, vector<32x128xf32>, vector<64x128xf32> -> vector<64x128xf32>
    %c0_9 = arith.constant 0 : index
    %c0_10 = arith.constant 0 : index
    %10 = vector.load %arg5[%c0_9, %c0_10] : memref<64x1xf32, #tpu.memory_space<vmem>>, vector<64x1xf32>
    %11 = vector.broadcast %10 : vector<64x1xf32> to vector<64x128xf32>
    %12 = arith.addf %9, %11 : vector<64x128xf32>
    %cst_11 = arith.constant 0.000000e+00 : f32
    %13 = vector.broadcast %cst_11 : f32 to vector<64x128xf32>
    %14 = arith.maximumf %12, %13 : vector<64x128xf32>
    %c0_12 = arith.constant 0 : index
    %c0_13 = arith.constant 0 : index
    %15 = vector.load %arg6[%c0_12, %c0_13] : memref<32x64xf32, #tpu.memory_space<vmem>>, vector<32x64xf32>
    %cst_14 = arith.constant dense<0.000000e+00> : vector<32x128xf32>
    %16 = tpu.matmul %15, %14, %cst_14 {dimension_numbers = #tpu.dot_dimension_numbers<[1], [0], [0], [1], [0, 0, 1, 1], [], []>} : vector<32x64xf32>, vector<64x128xf32>, vector<32x128xf32> -> vector<32x128xf32>
    %c0_15 = arith.constant 0 : index
    %c0_16 = arith.constant 0 : index
    %17 = vector.load %arg7[%c0_15, %c0_16] : memref<32x1xf32, #tpu.memory_space<vmem>>, vector<32x1xf32>
    %18 = vector.broadcast %17 : vector<32x1xf32> to vector<32x128xf32>
    %19 = arith.addf %16, %18 : vector<32x128xf32>
    %cst_17 = arith.constant 0.000000e+00 : f32
    %20 = vector.broadcast %cst_17 : f32 to vector<32x128xf32>
    %21 = arith.maximumf %19, %20 : vector<32x128xf32>
    %c0_18 = arith.constant 0 : index
    %c0_19 = arith.constant 0 : index
    %22 = vector.load %arg8[%c0_18, %c0_19] : memref<1x32xf32, #tpu.memory_space<vmem>>, vector<1x32xf32>
    %cst_20 = arith.constant dense<0.000000e+00> : vector<1x128xf32>
    %23 = tpu.matmul %22, %21, %cst_20 {dimension_numbers = #tpu.dot_dimension_numbers<[1], [0], [0], [1], [0, 0, 1, 1], [], []>} : vector<1x32xf32>, vector<32x128xf32>, vector<1x128xf32> -> vector<1x128xf32>
    %c0_21 = arith.constant 0 : index
    %c0_22 = arith.constant 0 : index
    %24 = vector.load %arg9[%c0_21, %c0_22] : memref<1x1xf32, #tpu.memory_space<vmem>>, vector<1x1xf32>
    %25 = vector.broadcast %24 : vector<1x1xf32> to vector<1x128xf32>
    %26 = arith.addf %23, %25 : vector<1x128xf32>
    %c0_23 = arith.constant 0 : index
    %c0_24 = arith.constant 0 : index
    %27 = vector.load %arg10[%c0_23, %c0_24] : memref<1x128xf32, #tpu.memory_space<vmem>>, vector<1x128xf32>
    tpu.vector_store %arg10[%c0_23, %c0_24], %26 {strides = array<i32>} : memref<1x128xf32, #tpu.memory_space<vmem>>, vector<1x128xf32>,
    return
  }
  func.func @transform_0(%arg0: i32) -> (i32, i32) {
    %c0_i32 = arith.constant 0 : i32
    %c0_i32_0 = arith.constant 0 : i32
    return %arg0, %c0_i32 : i32, i32
  }
  func.func @transform_1(%arg0: i32) -> (i32, i32) {
    %c0_i32 = arith.constant 0 : i32
    %c0_i32_0 = arith.constant 0 : i32
    %c0_i32_1 = arith.constant 0 : i32
    return %c0_i32, %c0_i32_0 : i32, i32
  }
  func.func @transform_2(%arg0: i32) -> (i32, i32) {
    %c0_i32 = arith.constant 0 : i32
    %c0_i32_0 = arith.constant 0 : i32
    %c0_i32_1 = arith.constant 0 : i32
    return %c0_i32, %c0_i32_0 : i32, i32
  }
  func.func @transform_3(%arg0: i32) -> (i32, i32) {
    %c0_i32 = arith.constant 0 : i32
    %c0_i32_0 = arith.constant 0 : i32
    %c0_i32_1 = arith.constant 0 : i32
    return %c0_i32, %c0_i32_0 : i32, i32
  }
  func.func @transform_4(%arg0: i32) -> (i32, i32) {
    %c0_i32 = arith.constant 0 : i32
    %c0_i32_0 = arith.constant 0 : i32
    %c0_i32_1 = arith.constant 0 : i32
    return %c0_i32, %c0_i32_0 : i32, i32
  }
  func.func @transform_5(%arg0: i32) -> (i32, i32) {
    %c0_i32 = arith.constant 0 : i32
    %c0_i32_0 = arith.constant 0 : i32
    %c0_i32_1 = arith.constant 0 : i32
    return %c0_i32, %c0_i32_0 : i32, i32
  }
  func.func @transform_6(%arg0: i32) -> (i32, i32) {
    %c0_i32 = arith.constant 0 : i32
    %c0_i32_0 = arith.constant 0 : i32
    %c0_i32_1 = arith.constant 0 : i32
    return %c0_i32, %c0_i32_0 : i32, i32
  }
  func.func @transform_7(%arg0: i32) -> (i32, i32) {
    %c0_i32 = arith.constant 0 : i32
    %c0_i32_0 = arith.constant 0 : i32
    %c0_i32_1 = arith.constant 0 : i32
    return %c0_i32, %c0_i32_0 : i32, i32
  }
  func.func @transform_8(%arg0: i32) -> (i32, i32) {
    %c0_i32 = arith.constant 0 : i32
    %c0_i32_0 = arith.constant 0 : i32
    %c0_i32_1 = arith.constant 0 : i32
    return %c0_i32, %c0_i32_0 : i32, i32
  }
  func.func @transform_9(%arg0: i32) -> (i32, i32) {
    %c0_i32 = arith.constant 0 : i32
    %c0_i32_0 = arith.constant 0 : i32
    return %c0_i32, %arg0 : i32, i32
  }
}

</mosaic_0001>

<bundles_post_ra>
// kernel: simple_nn_forward.1
= control target key start
LH: loop header
LB: loop body
LE: loop exit
PB: predicated region body
PF: predicated region fallthrough
CT: control target
= control target key end

     0   :  { %s870_s11 = smov 0   ;;  %s1038_s0 = inlined_call_operand.vmem [shape: f32[256,4], index: 0, kind: input, shape index: {}]   ;;  %s1039_s1 = inlined_call_operand.vmem [shape: f32[32,4], index: 1, kind: input, shape index: {}]   ;;  %s1040_s2 = inlined_call_operand.vmem [shape: f32[32,1], index: 2, kind: input, shape index: {}]   ;;  %s1041_s3 = inlined_call_operand.vmem [shape: f32[64,32], index: 3, kind: input, shape index: {}]   ;;  %s1042_s4 = inlined_call_operand.vmem [shape: f32[64,1], index: 4, kind: input, shape index: {}]   ;;  %s1043_s5 = inlined_call_operand.vmem [shape: f32[32,64], index: 5, kind: input, shape index: {}]   ;;  %s1044_s6 = inlined_call_operand.vmem [shape: f32[32,1], index: 6, kind: input, shape index: {}]   ;;  %s1045_s7 = inlined_call_operand.vmem [shape: f32[1,32], index: 7, kind: input, shape index: {}]   ;;  %s1046_s8 = inlined_call_operand.<no memory space> [shape: f32[1,1], index: 8, kind: input, shape index: {}]   ;;  %s1047_s9 = inlined_call_operand.vmem [shape: f32[1,256], index: 9, kind: output, shape index: {}]  }
   0x1   :  { %v14_v0 = vstv %s1046_s8 }
   0x2   :  { %15 = vst [vmem:[#allocation2] sm:$0x1] %v14_v0 }
   0x3 LB: > { %s876_s12 = sadd.s32 4294967295, %s814_s11   ;;  %p758_p0 = scmp.ge.s32.totalorder %s814_s11, 1  ;;  %s814_s11 = sphi %s870_s11, %s21_s11  }
   0x4   : > { %p290_p1 = scmp.lt.s32.totalorder %s814_s11, 3 }
   0x6   : > { %p291_p2 = pnand %p758_p0, %p290_p1 }
   0x7   : > { %s759_s13 = sshll.u32 (!%p291_p2), %s876_s12, 4  ;;  %p330_p4 = scmp.lt.s32.totalorder (!%p291_p2), %s876_s12, 1 }
   0x8   : > { %294 = sbr.rel (%p291_p2) target bundleno = 744 (0x2e8), region = 56  ;;  %p325_p3 = scmp.lt.s32.totalorder (!%p291_p2), %s759_s13, 31 }
   0xd   : > { %s1049_s13 = smov (!%p325_p3, %s759_s13), 31  ;;  %vm377_vm0 = vcmask 31744   ;;  %v356_v6 = vld [vmem:[%s1040_s2 + $0x18] sm:$0xff]  ;;  %v816_v8 = vmov 0   ;;  %v354_v9 = vld [vmem:[%s1040_s2 + $0x8] sm:$0xff]  ;;  %v355_v11 = vld [vmem:[%s1040_s2 + $0x10] sm:$0xff] }
   0xe   : > { %s760_s8 = sshll.u32 %s1049_s13, 3  ;;  %805 = vset.pattern.permute.xlu0 %v816_v8  ;;  %806 = vset.pattern.permute.xlu1 %v816_v8  ;;  %v353_v14 = vld [vmem:[%s1040_s2] sm:$0xff]  ;;  %v484_v15 = vld [vmem:[%s1042_s4 + $0x28] sm:$0xff]  ;;  %v481_v19 = vld [vmem:[%s1042_s4 + $0x10] sm:$0xff]  ;;  %vm527_vm1 = vcmask 261120   ;;  %vm629_vm2 = vcmask 523264  }
   0xf   : > { %s884_s16 = scalar_lea.vmem %s1038_s0, %s760_s8  ;;  %374 = vperm.xlu0 %805, %v356_v6   ;;  %807 = vset.pattern.permute.xlu2 %v816_v8  ;;  %v483_v18 = vld [vmem:[%s1042_s4 + $0x20] sm:$0xff]  ;;  %v480_v22 = vld [vmem:[%s1042_s4 + $0x8] sm:$0xff]  ;;  %v608_v23 = vld [vmem:[%s1044_s6 + $0x18] sm:$0xff]  ;;  %s1051_s12 = smov (!%p330_p4, %s876_s12), 1 }
  0x10   : > { %v348_v1 = vld [vmem:[%s884_s16 + $0x78] sm:$0xff]  ;;  %v347_v2 = vld [vmem:[%s884_s16 + $0x70] sm:$0xff]  ;;  %v346_v3 = vld [vmem:[%s884_s16 + $0x68] sm:$0xff]  ;;  %364 = vperm.xlu1 %806, %v354_v9  }
  0x11   : > { %761 = vmatpush.xpose.msk.msra.mxu0 %vm377_vm0, %v348_v1  ;;  %v345_v4 = vld [vmem:[%s884_s16 + $0x60] sm:$0xff]  ;;  %v344_v5 = vld [vmem:[%s884_s16 + $0x58] sm:$0xff]  ;;  %v343_v7 = vld [vmem:[%s884_s16 + $0x50] sm:$0xff] }
  0x12   : > { %v342_v10 = vld [vmem:[%s884_s16 + $0x48] sm:$0xff]  ;;  %v341_v12 = vld [vmem:[%s884_s16 + $0x40] sm:$0xff]  ;;  %v340_v13 = vld [vmem:[%s884_s16 + $0x38] sm:$0xff] }
  0x13   : > { %v339_v16 = vld [vmem:[%s884_s16 + $0x30] sm:$0xff]  ;;  %v338_v17 = vld [vmem:[%s884_s16 + $0x28] sm:$0xff]  ;;  %v337_v20 = vld [vmem:[%s884_s16 + $0x20] sm:$0xff] }
  0x14   : > { %v336_v21 = vld [vmem:[%s884_s16 + $0x18] sm:$0xff]  ;;  %v335_v24 = vld [vmem:[%s884_s16 + $0x10] sm:$0xff]  ;;  %v334_v25 = vld [vmem:[%s884_s16 + $0x8] sm:$0xff] }
  0x15   : > { %762 = vmatpush.xpose.msk.msra.mxu0 %vm377_vm0, %v347_v2  ;;  %v607_v26 = vld [vmem:[%s1044_s6 + $0x10] sm:$0xff]  ;;  %v605_v27 = vld [vmem:[%s1044_s6] sm:$0xff]  ;;  %v350_v31 = vld [vmem:[%s1039_s1 + $0x8] sm:$0xff] }
  0x16   : > { %v333_v28 = vld [vmem:[%s884_s16] sm:$0xff]  ;;  %v351_v32 = vld [vmem:[%s1039_s1 + $0x10] sm:$0xff]  ;;  %v352_v33 = vld [vmem:[%s1039_s1 + $0x18] sm:$0xff]  ;;  %s332_s16 = scalar_lea.vmem %s1047_s9, %s1051_s12 }
  0x17   : > { %369 = vperm.xlu0 %805, %v355_v11   ;;  %v349_v29 = vld [vmem:[%s1039_s1] sm:$0xff]  ;;  %v486_v36 = vld [vmem:[%s1042_s4 + $0x38] sm:$0xff]  ;;  %v485_v40 = vld [vmem:[%s1042_s4 + $0x30] sm:$0xff] }
  0x18   : > { %359 = vperm.xlu1 %806, %v353_v14   ;;  %v676_v30 = vld [vmem:[#allocation2] sm:$0x1]  ;;  %524 = vperm.xlu2 %807, %v486_v36   ;;  %v482_v48 = vld [vmem:[%s1042_s4 + $0x18] sm:$0xff]  ;;  %v472_v55 = vld [vmem:[%s1041_s3 + $0x8] sm:$0xff] }
  0x19   : > { %763 = vmatpush.xpose.msk.msra.mxu0 %vm377_vm0, %v346_v3  ;;  %v471_v53 = vld [vmem:[%s1041_s3] sm:$0xff]  ;;  %v473_v56 = vld [vmem:[%s1041_s3 + $0x10] sm:$0xff]  ;;  %v474_v57 = vld [vmem:[%s1041_s3 + $0x18] sm:$0xff] }
  0x1a   : > { %v479_v54 = vld [vmem:[%s1042_s4] sm:$0xff]  ;;  %v606_v58 = vld [vmem:[%s1044_s6 + $0x8] sm:$0xff]  ;;  %v477_v61 = vld [vmem:[%s1041_s3 + $0x30] sm:$0xff] }
  0x1b   : > { %v475_v59 = vld [vmem:[%s1041_s3 + $0x20] sm:$0xff]  ;;  %v476_v60 = vld [vmem:[%s1041_s3 + $0x28] sm:$0xff]  ;;  %v478_v62 = vld [vmem:[%s1041_s3 + $0x38] sm:$0xff] }
  0x1d   : > { %764 = vmatpush.xpose.msk.msra.mxu0 %vm377_vm0, %v345_v4 }
  0x1f   : > { %514 = vperm.xlu0 %805, %v484_v15  }
  0x20   : > { %509 = vperm.xlu1 %806, %v483_v18   ;;  %519 = vperm.xlu2 %807, %v485_v40  }
  0x21   : > { %765 = vmatpush.xpose.msk.msra.mxu0 %vm377_vm0, %v344_v5 }
  0x25   : > { %766 = vmatpush.xpose.msk.msra.mxu0 %vm377_vm0, %v343_v7 }
  0x27   : > { %499 = vperm.xlu0 %805, %v481_v19  }
  0x28   : > { %494 = vperm.xlu1 %806, %v480_v22   ;;  %504 = vperm.xlu2 %807, %v482_v48  }
  0x29   : > { %767 = vmatpush.xpose.msk.msra.mxu0 %vm377_vm0, %v342_v10 }
  0x2d   : > { %768 = vmatpush.xpose.msk.msra.mxu0 %vm377_vm0, %v341_v12 }
  0x2f   : > { %626 = vperm.xlu0 %805, %v608_v23  }
  0x30   : > { %621 = vperm.xlu1 %806, %v607_v26   ;;  %489 = vperm.xlu2 %807, %v479_v54  }
  0x31   : > { %769 = vmatpush.xpose.msk.msra.mxu0 %vm377_vm0, %v340_v13 }
  0x35   : > { %770 = vmatpush.xpose.msk.msra.mxu0 %vm377_vm0, %v339_v16 }
  0x37   : > { %611 = vperm.xlu0 %805, %v605_v27  }
  0x38   : > { %679 = vperm.xlu1 %806, %v676_v30   ;;  %616 = vperm.xlu2 %807, %v606_v58  }
  0x39   : > { %771 = vmatpush.xpose.msk.msra.mxu0 %vm377_vm0, %v338_v17 }
  0x3d   : > { %772 = vmatpush.xpose.msk.msra.mxu0 %vm377_vm0, %v337_v20 }
  0x41   : > { %773 = vmatpush.xpose.msk.msra.mxu0 %vm377_vm0, %v336_v21 }
  0x45   : > { %774 = vmatpush.xpose.msk.msra.mxu0 %vm377_vm0, %v335_v24 }
  0x49   : > { %775 = vmatpush.xpose.msk.msra.mxu0 %vm377_vm0, %v334_v25 }
  0x4d   : > { %776 = vmatpush.xpose.msk.msra.mxu0 %vm377_vm0, %v333_v28 }
  0x50   : > { %777 = vmatmul.msk.f32.vlgmr.msra.gmra.mxu0 %vm377_vm0, %v349_v29 }
  0x58   : > { %778 = vmatmul.msk.f32.gmra.mxu0 %vm377_vm0, %v350_v31  ;;  %v601_v31 = vld [vmem:[%s1043_s5] sm:$0xff] }
  0x60   : > { %779 = vmatmul.msk.f32.gmra.mxu0 %vm377_vm0, %v351_v32  ;;  %v602_v32 = vld [vmem:[%s1043_s5 + $0x8] sm:$0xff] }
  0x68   : > { %780 = vmatmul.msk.f32.gmra.mxu0 %vm377_vm0, %v352_v33  ;;  %v603_v33 = vld [vmem:[%s1043_s5 + $0x10] sm:$0xff] }
  0x72   : > { %v525_v4 = vpop.permute.xlu2 %524 }
  0x7a   : > { %v520_v6 = vpop.permute.xlu2 %519 }
  0x81   : > { %v375_v37 = vpop.permute.xlu0 %374 }
  0x82   : > { %v365_v39 = vpop.permute.xlu1 %364  ;;  %v505_v10 = vpop.permute.xlu2 %504 }
  0x89   : > { %v370_v41 = vpop.permute.xlu0 %369 }
  0x8a   : > { %v360_v47 = vpop.permute.xlu1 %359  ;;  %v490_v24 = vpop.permute.xlu2 %489 }
  0x91   : > { %v515_v8 = vpop.permute.xlu0 %514 }
  0x92   : > { %v510_v9 = vpop.permute.xlu1 %509 }
  0x99   : > { %v500_v20 = vpop.permute.xlu0 %499 }
  0x9a   : > { %v495_v23 = vpop.permute.xlu1 %494 }
  0xcd   : > { %v455_v34 = vpop.f32.mrf.mxu0 }
  0xce   : > { %v456_v49 = vadd.f32 %v455_v34, %v360_v47  ;;  %v604_v34 = vld [vmem:[%s1043_s5 + $0x18] sm:$0xff] }
  0xd0   : > { %v467_v52 = vmax.f32 %v456_v49, 0.0 }
  0xd5   : > { %v458_v35 = vpop.f32.mrf.mxu0 }
  0xd6   : > { %v459_v45 = vadd.f32 %v458_v35, %v365_v39  ;;  %v622_v39 = vpop.permute.xlu1 %621 }
  0xd8   : > { %v468_v51 = vmax.f32 %v459_v45, 0.0 }
  0xdd   : > { %v461_v38 = vpop.f32.mrf.mxu0 }
  0xde   : > { %v462_v43 = vadd.f32 %v461_v38, %v370_v41  ;;  %v627_v38 = vpop.permute.xlu0 %626 }
  0xe0   : > { %v469_v50 = vmax.f32 %v462_v43, 0.0  ;;  %v617_v43 = vpop.permute.xlu2 %616 }
  0xe5   : > { %v464_v42 = vpop.f32.mrf.mxu0 }
  0xe6   : > { %v465_v44 = vadd.f32 %v464_v42, %v375_v37 }
  0xe8   : > { %v470_v46 = vmax.f32 %v465_v44, 0.0 }
  0xea   : > { %564 = vmatpush.msra.mxu1 %v470_v46  ;;  %v612_v46 = vpop.permute.xlu0 %611 }
  0xec   : > { %565 = vmatpush.msra.mxu1 %v469_v50 }
  0xee   : > { %566 = vmatpush.msra.mxu1 %v468_v51  ;;  %v675_v51 = vld [vmem:[%s1045_s7] sm:$0x1] }
  0xf0   : > { %567 = vmatpush.msra.mxu1 %v467_v52  ;;  %v680_v52 = vpop.permute.xlu1 %679 }
  0xf1   : > { %781 = vmatmul.msk.f32.vlgmr.msra.gmra.mxu1 %vm527_vm1, %v471_v53  ;;  %v682_v53 = vperm.slane %v680_v52, 0 }
  0xf9   : > { %782 = vmatmul.msk.f32.gmra.mxu1 %vm527_vm1, %v472_v55 }
 0x101   : > { %783 = vmatmul.msk.f32.gmra.mxu1 %vm527_vm1, %v473_v56 }
 0x109   : > { %784 = vmatmul.msk.f32.gmra.mxu1 %vm527_vm1, %v474_v57 }
 0x111   : > { %785 = vmatmul.msk.f32.gmra.mxu1 %vm527_vm1, %v475_v59 }
 0x119   : > { %786 = vmatmul.msk.f32.gmra.mxu1 %vm527_vm1, %v476_v60 }
 0x121   : > { %787 = vmatmul.msk.f32.gmra.mxu1 %vm527_vm1, %v477_v61 }
 0x129   : > { %788 = vmatmul.msk.f32.gmra.mxu1 %vm527_vm1, %v478_v62 }
 0x16e   : > { %v569_v63 = vpop.f32.mrf.mxu1 }
 0x16f   : > { %v570_v27 = vadd.f32 %v569_v63, %v490_v24 }
 0x171   : > { %v593_v30 = vmax.f32 %v570_v27, 0.0 }
 0x176   : > { %v572_v0 = vpop.f32.mrf.mxu1 }
 0x177   : > { %v573_v25 = vadd.f32 %v572_v0, %v495_v23 }
 0x179   : > { %v594_v29 = vmax.f32 %v573_v25, 0.0 }
 0x17e   : > { %v575_v1 = vpop.f32.mrf.mxu1 }
 0x17f   : > { %v576_v21 = vadd.f32 %v575_v1, %v500_v20 }
 0x181   : > { %v595_v28 = vmax.f32 %v576_v21, 0.0 }
 0x186   : > { %v578_v2 = vpop.f32.mrf.mxu1 }
 0x187   : > { %v579_v18 = vadd.f32 %v578_v2, %v505_v10 }
 0x189   : > { %v596_v26 = vmax.f32 %v579_v18, 0.0 }
 0x18e   : > { %v581_v3 = vpop.f32.mrf.mxu1 }
 0x18f   : > { %v582_v16 = vadd.f32 %v581_v3, %v510_v9 }
 0x191   : > { %v597_v22 = vmax.f32 %v582_v16, 0.0 }
 0x196   : > { %v584_v5 = vpop.f32.mrf.mxu1 }
 0x197   : > { %v585_v14 = vadd.f32 %v584_v5, %v515_v8 }
 0x199   : > { %v598_v19 = vmax.f32 %v585_v14, 0.0 }
 0x19e   : > { %v587_v7 = vpop.f32.mrf.mxu1 }
 0x19f   : > { %v588_v12 = vadd.f32 %v587_v7, %v520_v6 }
 0x1a1   : > { %v599_v17 = vmax.f32 %v588_v12, 0.0 }
 0x1a6   : > { %v590_v11 = vpop.f32.mrf.mxu1 }
 0x1a7   : > { %v591_v13 = vadd.f32 %v590_v11, %v525_v4 }
 0x1a9   : > { %v600_v15 = vmax.f32 %v591_v13, 0.0 }
 0x1ab   : > { %650 = vmatpush.msra.mxu2 %v600_v15 }
 0x1ad   : > { %651 = vmatpush.msra.mxu2 %v599_v17 }
 0x1af   : > { %652 = vmatpush.msra.mxu2 %v598_v19 }
 0x1b1   : > { %653 = vmatpush.msra.mxu2 %v597_v22 }
 0x1b3   : > { %654 = vmatpush.msra.mxu2 %v596_v26 }
 0x1b5   : > { %655 = vmatpush.msra.mxu2 %v595_v28 }
 0x1b7   : > { %656 = vmatpush.msra.mxu2 %v594_v29 }
 0x1b9   : > { %657 = vmatpush.msra.mxu2 %v593_v30 }
 0x1ba   : > { %789 = vmatmul.msk.f32.vlgmr.msra.gmra.mxu2 %vm629_vm2, %v601_v31 }
 0x1c2   : > { %790 = vmatmul.msk.f32.gmra.mxu2 %vm629_vm2, %v602_v32 }
 0x1ca   : > { %791 = vmatmul.msk.f32.gmra.mxu2 %vm629_vm2, %v603_v33 }
 0x1d2   : > { %792 = vmatmul.msk.f32.gmra.mxu2 %vm629_vm2, %v604_v34 }
 0x23d   : > { %v659_v35 = vpop.f32.mrf.mxu2 }
 0x23e   : > { %v660_v47 = vadd.f32 %v659_v35, %v612_v46 }
 0x240   : > { %v671_v50 = vmax.f32 %v660_v47, 0.0 }
 0x245   : > { %v662_v36 = vpop.f32.mrf.mxu2 }
 0x246   : > { %v663_v44 = vadd.f32 %v662_v36, %v617_v43 }
 0x248   : > { %v672_v49 = vmax.f32 %v663_v44, 0.0 }
 0x24d   : > { %v665_v37 = vpop.f32.mrf.mxu2 }
 0x24e   : > { %v666_v41 = vadd.f32 %v665_v37, %v622_v39 }
 0x250   : > { %v673_v48 = vmax.f32 %v666_v41, 0.0 }
 0x255   : > { %v668_v40 = vpop.f32.mrf.mxu2 }
 0x256   : > { %v669_v42 = vadd.f32 %v668_v40, %v627_v38 }
 0x258   : > { %v674_v45 = vmax.f32 %v669_v42, 0.0 }
 0x25a   : > { %698 = vmatpush.msra.mxu3 %v674_v45 }
 0x25c   : > { %699 = vmatpush.msra.mxu3 %v673_v48 }
 0x25e   : > { %700 = vmatpush.msra.mxu3 %v672_v49 }
 0x260   : > { %701 = vmatpush.msra.mxu3 %v671_v50 }
 0x261   : > { %793 = vmatmul.msk.f32.vlgmr.msra.gmra.mxu3 %vm527_vm1, %v675_v51 }
 0x2e4   : > { %v703_v54 = vpop.f32.mrf.mxu3 }
 0x2e5   : > { %v704_v55 = vadd.f32 %v703_v54, %v682_v53 }
 0x2e7   : > { %706 = vst [vmem:[%s332_s16] sm:$0x1] %v704_v55 }
 0x2e8 PF: > { %s21_s11 = sadd.s32 1, %s814_s11  }
 0x2e9   : > { %p18_p5 = scmp.ge.s32.totalorder %s21_s11, 4  }
 0x2eb   :  { %20 = sbr.rel (!%p18_p5) target bundleno = 3 (0x3), region = 86 }

</bundles_post_ra>
